<compile_context>
chip_gen: v7x
topology: tpu7x:2x2x1
jax: 0.10.0
libtpu: 0.0.40
codegen_flags: <defaults>
</compile_context>

<pallas_src>
import math

import jax
import jax.numpy as jnp
from jax.experimental import pallas as pl
from jax.experimental.pallas import tpu as pltpu

_TWO_PI = 2.0 * math.pi
_LANE = 128
_SUBLANE = 8


def gfp_kernel(x_ref, w_ref, o_ref):
    """x_ref: (TB, 1), w_ref: (1, H), o_ref: (TB, 2*H) with H % 128 == 0."""
    half = w_ref.shape[1]
    x = x_ref[...]                      # (TB, 1)
    w = w_ref[...]                      # (1, H)
    # Outer product via broadcast; fold the 2*pi into the tiny (TB, 1) operand
    # so the full-tile work is a single VPU multiply.
    x_proj = (x * _TWO_PI) * w          # (TB, H), f32
    # Both half-width stores are 128-lane aligned -> unmasked vst.
    o_ref[:, :half] = jnp.sin(x_proj)
    o_ref[:, half:] = jnp.cos(x_proj)


def gaussian_fourier_projection(x, W, *, block_b=256):
    """Equivalent of GaussianFourierProjection.forward(x) with frozen W.

    x: (B,) float timesteps, W: (embed_dim // 2,) frozen Gaussian weights.
    Returns (B, embed_dim) = concat([sin(2*pi*x*W), cos(2*pi*x*W)], axis=-1).
    """
    B = x.shape[0]
    half = W.shape[0]

    # Lane-dense feature dim.
    half_p = ((half + _LANE - 1) // _LANE) * _LANE
    # Batch tile: multiple of 8 sublanes, capped at block_b.
    tb = min(block_b, ((B + _SUBLANE - 1) // _SUBLANE) * _SUBLANE)
    tb = ((tb + _SUBLANE - 1) // _SUBLANE) * _SUBLANE
    b_p = ((B + tb - 1) // tb) * tb

    x2d = x.reshape(B, 1).astype(jnp.float32)
    if b_p != B:
        x2d = jnp.pad(x2d, ((0, b_p - B), (0, 0)))
    w2d = W.reshape(1, half).astype(jnp.float32)
    if half_p != half:
        w2d = jnp.pad(w2d, ((0, 0), (0, half_p - half)))

    out = pl.pallas_call(
        gfp_kernel,
        out_shape=jax.ShapeDtypeStruct((b_p, 2 * half_p), jnp.float32),
        grid_spec=pltpu.PrefetchScalarGridSpec(
            num_scalar_prefetch=0,
            grid=(b_p // tb,),
            in_specs=[
                pl.BlockSpec((tb, 1), lambda i: (i, 0)),        # x tile
                pl.BlockSpec((1, half_p), lambda i: (0, 0)),    # W resident
            ],
            out_specs=pl.BlockSpec((tb, 2 * half_p), lambda i: (i, 0)),
        ),
        compiler_params=pltpu.CompilerParams(
            dimension_semantics=("parallel",),   # shard batch tiles across TCs (v7x)
        ),
    )(x2d, w2d)

    if b_p == B and half_p == half:
        return out
    # Un-pad: slice the valid sin / cos halves back out.
    sin_part = out[:B, :half]
    cos_part = out[:B, half_p:half_p + half]
    return jnp.concatenate([sin_part, cos_part], axis=-1)


if __name__ == "__main__":
    key = jax.random.PRNGKey(0)
    kx, kw = jax.random.split(key, 2)

    # Small, module-consistent shapes: B timesteps, embed_dim=256 (half=128).
    B, embed_dim, scale = 64, 256, 30.0
    half = embed_dim // 2

    x = jax.random.uniform(kx, (B,), dtype=jnp.float32)              # timesteps
    W = jax.random.normal(kw, (half,), dtype=jnp.float32) * scale    # frozen proj

    out = gaussian_fourier_projection(x, W, block_b=16)  # grid=(4,) batch tiles
    out = jax.block_until_ready(out)

    # Pure-JAX reference matching the PyTorch forward.
    x_proj = x[:, None] * W[None, :] * (2.0 * math.pi)
    ref = jnp.concatenate([jnp.sin(x_proj), jnp.cos(x_proj)], axis=-1)

    assert out.shape == (B, embed_dim), out.shape
    assert jnp.allclose(out, ref, atol=2e-3, rtol=0), float(
        jnp.max(jnp.abs(out - ref))
    )

    print("KERNEL_OK")
</pallas_src>

<mosaic_0001>
module attributes {stable_mosaic.version = 11 : i64} {
  func.func @gfp_kernel(%arg0: i32, %arg1: memref<16x1xf32, #tpu.memory_space<vmem>>, %arg2: memref<1x128xf32, #tpu.memory_space<vmem>>, %arg3: memref<16x256xf32, #tpu.memory_space<vmem>>) attributes {dimension_semantics = [#tpu.dimension_semantics<parallel>], iteration_bounds = array<i64: 4>, scalar_prefetch = 0 : i64, scratch_operands = 0 : i64, tpu.core_type = #tpu.core_type<tc>, window_params = [{transform_indices = @transform_0, window_bounds = array<i64: 16, 1>}, {pipeline_mode = #tpu.pipeline_mode<synchronous>, transform_indices = @transform_1, window_bounds = array<i64: 1, 128>}, {transform_indices = @transform_2, window_bounds = array<i64: 16, 256>}]} {
    %c0 = arith.constant 0 : index
    %c0_0 = arith.constant 0 : index
    %0 = vector.load %arg1[%c0, %c0_0] : memref<16x1xf32, #tpu.memory_space<vmem>>, vector<16x1xf32>
    %c0_1 = arith.constant 0 : index
    %c0_2 = arith.constant 0 : index
    %1 = vector.load %arg2[%c0_1, %c0_2] : memref<1x128xf32, #tpu.memory_space<vmem>>, vector<1x128xf32>
    %cst = arith.constant 6.28318548 : f32
    %2 = vector.broadcast %cst : f32 to vector<16x1xf32>
    %3 = arith.mulf %0, %2 : vector<16x1xf32>
    %4 = vector.broadcast %3 : vector<16x1xf32> to vector<16x128xf32>
    %5 = vector.broadcast %1 : vector<1x128xf32> to vector<16x128xf32>
    %6 = arith.mulf %4, %5 : vector<16x128xf32>
    %7 = math.sin %6 : vector<16x128xf32>
    %c0_3 = arith.constant 0 : index
    %c0_4 = arith.constant 0 : index
    %8 = vector.load %arg3[%c0_3, %c0_4] : memref<16x256xf32, #tpu.memory_space<vmem>>, vector<16x128xf32>
    tpu.vector_store %arg3[%c0_3, %c0_4], %7 {strides = array<i32>} : memref<16x256xf32, #tpu.memory_space<vmem>>, vector<16x128xf32>,
    %9 = math.cos %6 : vector<16x128xf32>
    %c0_5 = arith.constant 0 : index
    %c128 = arith.constant 128 : index
    %10 = vector.load %arg3[%c0_5, %c128] : memref<16x256xf32, #tpu.memory_space<vmem>>, vector<16x128xf32>
    tpu.vector_store %arg3[%c0_5, %c128], %9 {strides = array<i32>} : memref<16x256xf32, #tpu.memory_space<vmem>>, vector<16x128xf32>,
    return
  }
  func.func @transform_0(%arg0: i32) -> (i32, i32) {
    %c0_i32 = arith.constant 0 : i32
    %c0_i32_0 = arith.constant 0 : i32
    return %arg0, %c0_i32 : i32, i32
  }
  func.func @transform_1(%arg0: i32) -> (i32, i32) {
    %c0_i32 = arith.constant 0 : i32
    %c0_i32_0 = arith.constant 0 : i32
    %c0_i32_1 = arith.constant 0 : i32
    return %c0_i32, %c0_i32_0 : i32, i32
  }
  func.func @transform_2(%arg0: i32) -> (i32, i32) {
    %c0_i32 = arith.constant 0 : i32
    %c0_i32_0 = arith.constant 0 : i32
    return %arg0, %c0_i32 : i32, i32
  }
}

</mosaic_0001>

<bundles_post_ra>
// kernel: tpu_custom_call.1
= control target key start
LH: loop header
LB: loop body
LE: loop exit
PB: predicated region body
PF: predicated region fallthrough
CT: control target
= control target key end

     0   :  { %7 = vsyncpa [#allocation3], 0  ;;  %s1018_s0 = inlined_call_operand.vmem [shape: f32[64,1], index: 0, kind: input, shape index: {}]   ;;  %s1019_s1 = inlined_call_operand.vmem [shape: f32[1,128], index: 1, kind: input, shape index: {}]   ;;  %s1020_s2 = inlined_call_operand.hbm [shape: f32[64,256], index: 2, kind: output, shape index: {}]  }
   0x1   :  { %9 = vsyncpa [#allocation3 + $0x1], 0  ;;  %s849_s9 = smov 0   ;;  %s851_s10 = smov 0  }
   0x2   :  { %s853_s11 = smov 0   ;;  %s855_s12 = smov 0  }
   0x3 LB: > { %s870_s13 = sadd.s32 4294967295, %s822_s12   ;;  %s663_s14 = sadd.s32 4294967294, %s822_s12   ;;  %s822_s12 = sphi %s855_s12, %s1026_s12   ;;  %s818_s11 = sphi %s853_s11, %s1025_s11   ;;  %s814_s10 = sphi %s851_s10, %s1024_s10   ;;  %s810_s9 = sphi %s849_s9, %s1023_s9  }
   0x4   : > { %s874_s15 = sadd.s32 1, %s822_s12   ;;  %s69_s16 = sadd.s32 1, %s818_s11 }
   0x5   : > { %s66_s17 = ssub.s32 %s822_s12, %s874_s15  ;;  %p79_p0 = scmp.ne.s32.totalorder %s818_s11, %s814_s10 }
   0x6   : > { %p67_p1 = scmp.eq.s32.totalorder %s66_s17, 0  ;;  %p80_p2 = scmp.eq.s32.totalorder %s870_s13, 3 }
   0x7   : > { %p85_p3 = scmp.ne.s32.totalorder %s814_s10, %s810_s9  ;;  %p86_p4 = scmp.eq.s32.totalorder %s663_s14, 3 }
   0x8   : > { %s885_s18 = scalar_select %p67_p1, %s818_s11, %s69_s16  }
   0x9   : > { %p887_p5 = por %p80_p2, %p79_p0  ;;  %p891_p6 = por %p86_p4, %p85_p3 }
   0xa   : > { %p666_p7 = scmp.ge.s32.totalorder %s822_s12, 1  ;;  %p116_p8 = scmp.lt.s32.totalorder %s822_s12, 5 }
   0xc   : > { %p117_p9 = pnand %p666_p7, %p116_p8 }
   0xd   : > { %s668_s21 = sshll.u32 (!%p117_p9), %s870_s13, 1  ;;  %v824_v0 = vmov (!%p117_p9), 0   ;;  %v670_v5 = vld [vmem:[%s1019_s1] ss:$0 sm:$0xff] (!%p117_p9)  ;;  %v825_v26 = vmov (!%p117_p9), 683565275  }
   0xe   : > { %120 = sbr.rel (%p117_p9) target bundleno = 262 (0x106), region = 28  ;;  %751 = vset.pattern.permute.xlu0 (!%p117_p9), %v824_v0  ;;  %p139_p10 = scmp.lt.s32.totalorder (!%p117_p9), %s668_s21, 7  ;;  %v826_v30 = vmov (!%p117_p9), 2475754826   ;;  %v827_v32 = vmov (!%p117_p9), 2131351028  }
   0xf   : > { %v828_v34 = vmov (!%p117_p9), 2102212464   ;;  %v829_v36 = vmov (!%p117_p9), 920167782   ;;  %v830_v43 = vmov (!%p117_p9), 1326507024  }
  0x10   : > { %s135_s28 = sand.u32 (!%p117_p9), 1, %s814_s10   ;;  %s694_s3 = sshll.u32 (!%p117_p9), %s870_s13, 9 }
  0x11   : > { %s667_s29 = sshll.u32 (!%p117_p9), %s135_s28, 5  ;;  %s970_s7 = scalar_lea.hbm (!%p117_p9), %s1020_s2, %s694_s3 }
  0x12   : > { %s137_s30 = scalar_lea.vmem (!%p117_p9), [#allocation2], %s667_s29  ;;  %s977_s8 = scalar_lea.sflag (!%p117_p9), [#allocation3], %s135_s28 }
  0x13   : > { %s601_s4 = sshll.u32 (!%p117_p9), %s137_s30, 4  ;;  %s831_s14 = smov (!%p117_p9), [#allocation2]   ;;  %s972_s4 = int_to_ptr.vmem [resolvable:$true] %s601_s4 }
  0x14   : > { %s760_s13 = scalar_lea.vmem (!%p117_p9), %s972_s4, 512  ;;  %s764_s16 = sshll.u32 (!%p117_p9), %s831_s14, 4  ;;  %s765_s16 = int_to_ptr.vmem [resolvable:$false] %s764_s16 }
  0x15   : > { %s1028_s21 = smov (!%p139_p10, %s668_s21), 7  ;;  %p761_p11 = scmp.ne.s32.totalorder %s972_s4, %s760_s13 }
  0x16   : > { %s669_s22 = sshll.u32 %s1028_s21, 3  ;;  %s766_s17 = scalar_lea.vmem %s765_s16, 1024 }
  0x17   : > { %s142_s25 = scalar_lea.vmem %s1018_s0, %s669_s22  ;;  %p762_p12 = pnand %p761_p11, %p887_p5 }
  0x18   : > { %v145_v1 = vld [vmem:[%s142_s25] sm:$0xff]  ;;  %v146_v2 = vld [vmem:[%s142_s25 + $0x8] sm:$0xff]  ;;  %p767_p0 = scmp.lt.s32.totalorder %s972_s4, %s765_s16  ;;  %p768_p1 = scmp.lt.s32.totalorder %s766_s17, %s760_s13 }
  0x19   : > { %v148_v3 = vmul.f32 6.2831855, %v145_v1  ;;  %v149_v4 = vmul.f32 6.2831855, %v146_v2  ;;  %p763_p13 = pneg %p762_p12 }
  0x1a   : > { %p769_p2 = por %p768_p1, %p767_p0 }
  0x1b   : > { %152 = vperm.xlu0 %751, %v148_v3  }
  0x1c   : > { %p770_p3 = pnand %p769_p2, %p763_p13 }
  0x1f   : > { %157 = vperm.xlu0 %751, %v149_v4  }
  0x9a   : > { %v153_v6 = vpop.permute.xlu0 %152 }
  0x9b   : > { %v904_v7 = vmul.f32 %v670_v5, %v153_v6 }
  0x9d   : > { %v168_v8 = vand.u32 2147483647, %v904_v7  ;;  %v171_v9 = vand.u32 2139095040, %v904_v7  ;;  %vm170_vm14 = vcmp.lt.s32.totalorder %v904_v7, 0 }
  0x9e   : > { %v158_v10 = vpop.permute.xlu0 %157 }
  0x9f   : > { %v172_v11 = vshrl.u32 %v171_v9, 23  ;;  %v908_v12 = vmul.f32 %v670_v5, %v158_v10  ;;  %v175_v13 = vand.u32 8388607, %v168_v8  ;;  %vm169_vm15 = vcmp.le.f32.partialorder %v168_v8, 0.7853982 }
  0xa1   : > { %v671_v14 = vadd.s32 4294967169, %v172_v11  ;;  %v275_v15 = vand.u32 2139095040, %v908_v12  ;;  %v176_v17 = vor.u32 8388608, %v175_v13  ;;  %v272_v19 = vand.u32 2147483647, %v908_v12 }
  0xa3   : > { %v178_v16 = vadd.s32 1, %v671_v14  ;;  %v276_v18 = vshrl.u32 %v275_v15, 23  ;;  %v914_v24 = vshll.u32 %v176_v17, 8  ;;  %v279_v28 = vand.u32 8388607, %v272_v19 }
  0xa5   : > { %vm179_vm0 = vcmp.gt.s32.totalorder %v178_v16, 0  ;;  %v675_v21 = vadd.s32 4294967169, %v276_v18  ;;  %v280_v58 = vor.u32 8388608, %v279_v28 }
  0xa6   : > { %v180_v20 = vsel %vm179_vm0, %v178_v16, 0  ;;  %vm274_vm0 = vcmp.lt.s32.totalorder %v908_v12, 0 }
  0xa7   : > { %v181_v22 = vshrl.u32 %v180_v20, 5  ;;  %v182_v23 = vand.u32 31, %v180_v20  ;;  %v282_v29 = vadd.s32 1, %v675_v21  ;;  %v320_v9 = vshll.u32 %v280_v58, 8 }
  0xa9   : > { %v183_v25 = vsub.s32 32, %v182_v23  ;;  %v185_v27 = vshll.u32 %v825_v26, %v182_v23  ;;  %v188_v31 = vshll.u32 %v826_v30, %v182_v23  ;;  %v191_v33 = vshll.u32 %v827_v32, %v182_v23 }
  0xaa   : > { %v194_v35 = vshll.u32 %v828_v34, %v182_v23  ;;  %v197_v37 = vshll.u32 %v829_v36, %v182_v23  ;;  %vm200_vm1 = vcmp.lt.s32.totalorder %v181_v22, 1  ;;  %vm202_vm2 = vcmp.lt.s32.totalorder %v181_v22, 3 }
  0xab   : > { %v186_v38 = vshrl.u32 %v826_v30, %v183_v25  ;;  %v189_v39 = vshrl.u32 %v827_v32, %v183_v25  ;;  %v192_v40 = vshrl.u32 %v828_v34, %v183_v25  ;;  %v184_v41 = vshrl.u32 %v825_v26, %v183_v25 }
  0xac   : > { %v195_v42 = vshrl.u32 %v829_v36, %v183_v25  ;;  %v198_v44 = vshrl.u32 %v830_v43, %v183_v25  ;;  %vm283_vm3 = vcmp.gt.s32.totalorder %v282_v29, 0  ;;  %vm203_vm4 = vcmp.lt.s32.totalorder %v181_v22, 4 }
  0xad   : > { %v187_v45 = vor.u32 %v186_v38, %v185_v27  ;;  %v190_v46 = vor.u32 %v189_v39, %v188_v31  ;;  %v193_v47 = vor.u32 %v192_v40, %v191_v33  ;;  %v284_v50 = vsel %vm283_vm3, %v282_v29, 0 }
  0xae   : > { %v196_v48 = vor.u32 %v195_v42, %v194_v35  ;;  %v199_v49 = vor.u32 %v198_v44, %v197_v37  ;;  %vm201_vm5 = vcmp.lt.s32.totalorder %v181_v22, 2  ;;  %v286_v61 = vand.u32 31, %v284_v50 }
  0xaf   : > { %v204_v51 = vsel %vm200_vm1, %v184_v41, %v187_v45  ;;  %v205_v52 = vsel %vm203_vm4, %v193_v47, 2102212464  ;;  %v208_v53 = vsel %vm200_vm1, %v187_v45, %v190_v46  ;;  %v212_v54 = vsel %vm200_vm1, %v190_v46, %v193_v47 }
  0xb0   : > { %v206_v55 = vsel %vm202_vm2, %v190_v46, %v205_v52  ;;  %v209_v56 = vsel %vm203_vm4, %v196_v48, 920167782  ;;  %v213_v57 = vsel %vm203_vm4, %v199_v49, 1326507024  ;;  %v285_v5 = vshrl.u32 %v284_v50, 5 }
  0xb1   : > { %v210_v59 = vsel %vm202_vm2, %v193_v47, %v209_v56  ;;  %v214_v60 = vsel %vm202_vm2, %v196_v48, %v213_v57  ;;  %v207_v62 = vsel %vm201_vm5, %v204_v51, %v206_v55  ;;  %v287_v6 = vsub.s32 32, %v286_v61 }
  0xb2   : > { %v211_v63 = vsel %vm201_vm5, %v208_v53, %v210_v59  ;;  %v215_v0 = vsel %vm201_vm5, %v212_v54, %v214_v60  ;;  %v223_v10 = vmul.u32 %v914_v24, %v207_v62  ;;  %v289_v11 = vshll.u32 %v825_v26, %v286_v61 }
  0xb3   : > { %v927_v1 = vmul.u32.u64.low %v914_v24, %v215_v0  ;;  %v928_v2 = vmul.u32.u64.high %v914_v24, %v215_v0, %v927_v1  ;;  %v931_v3 = vmul.u32.u64.low %v914_v24, %v211_v63  ;;  %v932_v4 = vmul.u32.u64.high %v914_v24, %v211_v63, %v931_v3 }
  0xb4   : > { %v292_v13 = vshll.u32 %v826_v30, %v286_v61  ;;  %v295_v14 = vshll.u32 %v827_v32, %v286_v61  ;;  %v290_v15 = vshrl.u32 %v826_v30, %v287_v6  ;;  %v293_v16 = vshrl.u32 %v827_v32, %v287_v6 }
  0xb5   : > { %v296_v17 = vshrl.u32 %v828_v34, %v287_v6  ;;  %v298_v18 = vshll.u32 %v828_v34, %v286_v61  ;;  %vm225_vm6 = vc.u32 %v928_v2, %v931_v3  ;;  %v226_v20 = vadd.s32 1, %v932_v4 }
  0xb6   : > { %v299_v21 = vshrl.u32 %v829_v36, %v287_v6  ;;  %v301_v22 = vshll.u32 %v829_v36, %v286_v61  ;;  %v291_v23 = vor.u32 %v290_v15, %v289_v11  ;;  %v294_v25 = vor.u32 %v293_v16, %v292_v13 }
  0xb7   : > { %v297_v27 = vor.u32 %v296_v17, %v295_v14  ;;  %v302_v28 = vshrl.u32 %v830_v43, %v287_v6  ;;  %v227_v24 = vsel %vm225_vm6, %v226_v20, %v932_v4  ;;  %vm304_vm7 = vcmp.lt.s32.totalorder %v285_v5, 1 }
  0xb8   : > { %v300_v29 = vor.u32 %v299_v21, %v298_v18  ;;  %vm307_vm8 = vcmp.lt.s32.totalorder %v285_v5, 4  ;;  %v228_v30 = vadd.s32 %v227_v24, %v223_v10  ;;  %vm306_vm9 = vcmp.lt.s32.totalorder %v285_v5, 3 }
  0xb9   : > { %v303_v31 = vor.u32 %v302_v28, %v301_v22  ;;  %v309_v32 = vsel %vm307_vm8, %v297_v27, 2102212464  ;;  %v288_v33 = vshrl.u32 %v825_v26, %v287_v6  ;;  %v312_v34 = vsel %vm304_vm7, %v291_v23, %v294_v25 }
  0xba   : > { %v313_v35 = vsel %vm307_vm8, %v300_v29, 920167782  ;;  %v316_v37 = vsel %vm304_vm7, %v294_v25, %v297_v27  ;;  %v229_v38 = vadd.s32 536870912, %v228_v30  ;;  %vm305_vm10 = vcmp.lt.s32.totalorder %v285_v5, 2 }
  0xbb   : > { %v314_v36 = vsel %vm306_vm9, %v297_v27, %v313_v35  ;;  %v317_v39 = vsel %vm307_vm8, %v303_v31, 1326507024  ;;  %v308_v40 = vsel %vm304_vm7, %v288_v33, %v291_v23  ;;  %v310_v41 = vsel %vm306_vm9, %v294_v25, %v309_v32 }
  0xbc   : > { %v315_v42 = vsel %vm305_vm10, %v312_v34, %v314_v36  ;;  %v318_v43 = vsel %vm306_vm9, %v300_v29, %v317_v39  ;;  %v230_v44 = vshrl.u32 %v229_v38, 30  ;;  %v311_v50 = vsel %vm305_vm10, %v308_v40, %v310_v41 }
  0xbd   : > { %v319_v45 = vsel %vm305_vm10, %v316_v37, %v318_v43  ;;  %v942_v46 = vmul.u32.u64.low %v320_v9, %v315_v42  ;;  %v943_v47 = vmul.u32.u64.high %v320_v9, %v315_v42, %v942_v46  ;;  %v327_v53 = vmul.u32 %v320_v9, %v311_v50 }
  0xbe   : > { %v945_v48 = vmul.u32.u64.low %v320_v9, %v319_v45  ;;  %v946_v49 = vmul.u32.u64.high %v320_v9, %v319_v45, %v945_v48  ;;  %v231_v26 = vshll.u32 %v230_v44, 30  ;;  %v224_v1 = vadd.s32 %v931_v3, %v928_v2 }
  0xbf   : > { %v330_v52 = vadd.s32 1, %v943_v47  ;;  %v254_v23 = vsub.s32 4, %v230_v44  ;;  %vm273_vm1 = vcmp.le.f32.partialorder %v272_v19, 0.7853982  ;;  %vm260_vm8 = vweird.f32 %v904_v7 }
  0xc0   : > { %v232_v51 = vsub.s32 %v228_v30, %v231_v26  ;;  %vm329_vm11 = vc.u32 %v946_v49, %v942_v46  ;;  %v328_v2 = vadd.s32 %v942_v46, %v946_v49 }
  0xc1   : > { %v331_v55 = vsel %vm329_vm11, %v330_v52, %v943_v47  ;;  %v255_v32 = vsel %vm170_vm14, %v254_v23, %v230_v44 }
  0xc2   : > { %v234_v54 = vsub.s32 0, %v232_v51  ;;  %v332_v56 = vadd.s32 %v331_v55, %v327_v53  ;;  %v257_v37 = vsel %vm169_vm15, 0, %v255_v32 }
  0xc3   : > { %v261_v40 = vadd.s32 3, %v257_v37  ;;  %v471_v43 = vand.u32 3, %v257_v37 }
  0xc4   : > { %v672_v57 = vmin.u32 %v234_v54, %v232_v51  ;;  %v333_v58 = vadd.s32 536870912, %v332_v56 }
  0xc5   : > { %v262_v8 = vand.u32 3, %v261_v40  ;;  %vm476_vm2 = vcmp.eq.s32.totalorder %v471_v43, 2  ;;  %vm473_vm5 = vcmp.eq.s32.totalorder %v471_v43, 0  ;;  %vm472_vm7 = vcmp.lt.s32.totalorder %v471_v43, 2 }
  0xc6   : > { %v236_v59 = vclz %v672_v57  ;;  %v334_v60 = vshrl.u32 %v333_v58, 30 }
  0xc7   : > { %vm267_vm3 = vcmp.eq.s32.totalorder %v262_v8, 2  ;;  %vm264_vm4 = vcmp.eq.s32.totalorder %v262_v8, 0  ;;  %vm263_vm6 = vcmp.lt.s32.totalorder %v262_v8, 2 }
  0xc8   : > { %v673_v61 = vadd.s32 4294967294, %v236_v59  ;;  %v335_v62 = vshll.u32 %v334_v60, 30  ;;  %v358_v42 = vsub.s32 4, %v334_v60 }
  0xca   : > { %vm674_vm12 = vcmp.lt.s32.totalorder %v673_v61, 0  ;;  %v336_v0 = vsub.s32 %v332_v56, %v335_v62  ;;  %v359_v46 = vsel %vm274_vm0, %v358_v42, %v334_v60 }
  0xcb   : > { %v239_v63 = vsel %vm674_vm12, 0, %v673_v61 }
  0xcc   : > { %v240_v4 = vsub.s32 32, %v239_v63  ;;  %v244_v5 = vsub.s32 4294967266, %v239_v63  ;;  %v338_v6 = vsub.s32 0, %v336_v0  ;;  %v241_v9 = vshll.u32 %v232_v51, %v239_v63 }
  0xcd   : > { %v361_v51 = vsel %vm273_vm1, 0, %v359_v46 }
  0xce   : > { %v242_v10 = vshrl.u32 %v224_v1, %v240_v4  ;;  %v245_v11 = vadd.s32 127, %v244_v5  ;;  %v676_v13 = vmin.u32 %v338_v6, %v336_v0  ;;  %v365_v57 = vadd.s32 3, %v361_v51 }
  0xcf   : > { %v574_v61 = vand.u32 3, %v361_v51 }
  0xd0   : > { %v243_v14 = vor.u32 %v242_v10, %v241_v9  ;;  %v246_v15 = vshll.u32 %v245_v11, 23  ;;  %v340_v16 = vclz %v676_v13  ;;  %v366_v60 = vand.u32 3, %v365_v57 }
  0xd1   : > { %vm579_vm10 = vcmp.eq.s32.totalorder %v574_v61, 2  ;;  %vm576_vm12 = vcmp.eq.s32.totalorder %v574_v61, 0 }
  0xd2   : > { %v247_v17 = vor.u32 4788187, %v246_v15  ;;  %v677_v18 = vadd.s32 4294967294, %v340_v16  ;;  %v250_v21 = vcvt.s32.f32 %v243_v14  ;;  %vm371_vm9 = vcmp.eq.s32.totalorder %v366_v60, 2 }
  0xd3   : > { %vm368_vm11 = vcmp.eq.s32.totalorder %v366_v60, 0 }
  0xd4   : > { %v248_v20 = vand.u32 2147483647, %v247_v17  ;;  %vm678_vm13 = vcmp.lt.s32.totalorder %v677_v18, 0 }
  0xd5   : > { %v343_v25 = vsel %vm678_vm13, 0, %v677_v18  ;;  %vm367_vm13 = vcmp.lt.s32.totalorder %v366_v60, 2 }
  0xd6   : > { %v251_v22 = vmul.f32 %v250_v21, %v248_v20  ;;  %v344_v3 = vsub.s32 32, %v343_v25  ;;  %v348_v27 = vsub.s32 4294967266, %v343_v25  ;;  %v345_v24 = vshll.u32 %v336_v0, %v343_v25 }
  0xd8   : > { %v252_v28 = vxor.u32 2147483648, %v251_v22  ;;  %v346_v29 = vshrl.u32 %v328_v2, %v344_v3  ;;  %v349_v30 = vadd.s32 127, %v348_v27 }
  0xda   : > { %v253_v31 = vsel %vm170_vm14, %v252_v28, %v251_v22  ;;  %v347_v34 = vor.u32 %v346_v29, %v345_v24  ;;  %v350_v35 = vshll.u32 %v349_v30, 23  ;;  %vm575_vm14 = vcmp.lt.s32.totalorder %v574_v61, 2 }
  0xdb   : > { %v256_v33 = vsel %vm169_vm15, %v904_v7, %v253_v31  ;;  %vm364_vm15 = vweird.f32 %v908_v12 }
  0xdc   : > { %752 = vcosq.f32 %v256_v33  ;;  %v351_v38 = vor.u32 4788187, %v350_v35  ;;  %v354_v39 = vcvt.s32.f32 %v347_v34 }
  0xdd   : > { %754 = vsinq.f32 %v256_v33 }
  0xde   : > { %v352_v36 = vand.u32 2147483647, %v351_v38 }
  0xe0   : > { %v355_v41 = vmul.f32 %v354_v39, %v352_v36 }
  0xe2   : > { %v356_v45 = vxor.u32 2147483648, %v355_v41 }
  0xe4   : > { %v357_v44 = vsel %vm274_vm0, %v356_v45, %v355_v41 }
  0xe5   : > { %v360_v48 = vsel %vm273_vm1, %v908_v12, %v357_v44 }
  0xe6   : > { %v753_v47 = vpop.eup %752  ;;  %756 = vcosq.f32 %v360_v48 }
  0xe7   : > { %v755_v49 = vpop.eup %754  ;;  %v268_v26 = vxor.u32 2147483648, %v753_v47  ;;  %758 = vsinq.f32 %v360_v48 }
  0xe8   : > { %v265_v50 = vxor.u32 2147483648, %v755_v49 }
  0xe9   : > { %v269_v52 = vsel %vm267_vm3, %v268_v26, %v755_v49  ;;  %v478_v53 = vsel %vm476_vm2, %v268_v26, %v755_v49 }
  0xea   : > { %v266_v19 = vsel %vm264_vm4, %v753_v47, %v265_v50  ;;  %v475_v54 = vsel %vm473_vm5, %v753_v47, %v265_v50 }
  0xeb   : > { %v270_v55 = vsel %vm263_vm6, %v266_v19, %v269_v52  ;;  %v479_v56 = vsel %vm472_vm7, %v475_v54, %v478_v53 }
  0xec   : > { %v271_v58 = vsel %vm260_vm8, nan, %v270_v55  ;;  %v480_v59 = vsel %vm260_vm8, nan, %v479_v56 }
  0xed   : > { %376 = vst [vmem:[%s137_s30] sm:$0xff] %v271_v58  ;;  %584 = vst [vmem:[%s137_s30 + $0x8] sm:$0xff] %v480_v59 }
  0xf0   : > { %v757_v62 = vpop.eup %756 }
  0xf1   : > { %v759_v63 = vpop.eup %758  ;;  %v372_v0 = vxor.u32 2147483648, %v757_v62 }
  0xf2   : > { %v369_v1 = vxor.u32 2147483648, %v759_v63 }
  0xf3   : > { %v373_v7 = vsel %vm371_vm9, %v372_v0, %v759_v63  ;;  %v581_v4 = vsel %vm579_vm10, %v372_v0, %v759_v63 }
  0xf4   : > { %v370_v5 = vsel %vm368_vm11, %v757_v62, %v369_v1  ;;  %v578_v6 = vsel %vm576_vm12, %v757_v62, %v369_v1 }
  0xf5   : > { %v374_v9 = vsel %vm367_vm13, %v370_v5, %v373_v7  ;;  %v582_v10 = vsel %vm575_vm14, %v578_v6, %v581_v4 }
  0xf6   : > { %v375_v11 = vsel %vm364_vm15, nan, %v374_v9  ;;  %v583_v13 = vsel %vm364_vm15, nan, %v582_v10 }
  0xf7   : > { %377 = vst [vmem:[%s137_s30 + $0x10] sm:$0xff] %v375_v11  ;;  %585 = vst [vmem:[%s137_s30 + $0x18] sm:$0xff] %v583_v13 }
  0xf8   : > { %773 = shalt.err (!%p770_p3)
}
  0xf9   : > { %s774_s21 = scalar_lea.hbm %s970_s7, 512  ;;  %s778_s24 = scalar_lea.hbm %s1020_s2, 2048 }
  0xfa   : > { %p775_p4 = scmp.ne.s32.totalorder %s970_s7, %s774_s21  ;;  %p779_p9 = scmp.lt.u32.totalorder %s970_s7, %s1020_s2 }
  0xfb   : > { %p780_p10 = scmp.lt.u32.totalorder %s778_s24, %s774_s21  ;;  %p782_p12 = scmp.lt.u32.totalorder %s774_s21, %s970_s7 }
  0xfc   : > { %p776_p7 = pnand %p775_p4, %p887_p5 }
  0xfd   : > { %p781_p11 = por %p780_p10, %p779_p9 }
  0xfe   : > { %p777_p8 = pneg %p776_p7 }
  0xff   : > { %p783_p13 = por %p782_p12, %p781_p11 }
 0x101   : > { %p784_p0 = pnand %p783_p13, %p777_p8 }
 0x103   : > { %787 = shalt.err (!%p784_p0)
}
 0x104   : > { %s832_s27 = smov 256   ;;  %s833_s28 = smov 16  }
 0x105   : > { %703 = dma.vmem_to_hbm [thread:$0]  (%p887_p5), %s972_s4, 512, %s970_s7, %s977_s8, %s832_s27, %s832_s27, %s833_s28  }
 0x106 PF: > { %p709_p1 = scmp.ge.s32.totalorder %s822_s12, 2  ;;  %s616_s29 = sand.u32 1, %s810_s9  }
 0x107   : > { %s617_s30 = scalar_lea.sflag [#allocation3], %s616_s29 }
 0x108   : > { %p706_p2 = pnand %p709_p1, %p891_p6 }
 0x10a   : > { %805 = dma.done.wait (!%p706_p2), %s617_s30, 512  }
 0x10b   : > { %807 = vsyncadd (!%p706_p2), %s617_s30, 4294966784  ;;  %p12_p3 = scmp.ge.s32.totalorder %s874_s15, 6   ;;  %s1023_s9 = smov %s814_s10 }
 0x10c   : > { %s1024_s10 = smov %s818_s11  ;;  %s1025_s11 = smov %s885_s18 }
 0x10d   : > { %s1026_s12 = smov %s874_s15  ;;  %14 = sbr.rel (!%p12_p3) target bundleno = 3 (0x3), region = 63 }
 0x114   :  { %622 = vsyncpa [#allocation3], 1 }
 0x115   :  { %624 = vsyncpa [#allocation3 + $0x1], 1 }

</bundles_post_ra>
